<compile_context>
chip_gen: v5e
topology: v5e:2x2
jax: 0.10.0
libtpu: 0.0.40
codegen_flags: <defaults>
</compile_context>

<pallas_src>
import jax
import jax.numpy as jnp
from jax.experimental import pallas as pl
from jax.experimental.pallas import tpu as pltpu

_EPS = 1e-6
# ~2 MiB per block.  in + out, each double-buffered => 4x block bytes = 8 MiB of
# pipelined VMEM: fits v5e's 16 MiB scoped default and v7x's 32 MiB without
# raising vmem_limit_bytes, while being large enough (~85%+ of HBM roofline on
# v6e) to amortize the ~0.35 us per-grid-step pipeline overhead.
_TARGET_BLOCK_BYTES = 2 * 1024 * 1024


def _minmax_kernel(sc_ref, x_ref, o_ref):
    """Elementwise (x - shift) * scale on the current VMEM tile (pure VPU)."""
    shift = sc_ref[0]   # = min_val                          (f32 scalar in SMEM)
    scale = sc_ref[1]   # = 1 / (max_val - min_val + 1e-6)
    xv = x_ref[...].astype(jnp.float32)
    o_ref[...] = ((xv - shift) * scale).astype(o_ref.dtype)


def _choose_lanes(n: int) -> int:
    # Widest lane-dense slab (multiple of 128) that avoids a padding copy.
    for lanes in (1024, 512, 256, 128):
        if n % lanes == 0:
            return lanes
    return 128  # ragged element count: minimal pad to one 128-lane row


def _sublane_multiple(dtype) -> int:
    # dtype-aware second-minor tile: 8 for 4-byte, 16 for 2-byte, 32 for 1-byte.
    return max(8, 32 // jnp.dtype(dtype).itemsize)


@jax.jit
def minmax_normalize_forward(x: jax.Array, min_val=0.0, max_val=1.0) -> jax.Array:
    """(x - min_val) / (max_val - min_val + 1e-6) via a Pallas TPU kernel."""
    orig_shape = x.shape
    orig_dtype = x.dtype
    n = x.size
    itemsize = jnp.dtype(orig_dtype).itemsize
    sub = _sublane_multiple(orig_dtype)

    # --- layout: flatten to a (rows, lanes) lane-dense slab; pad only when the
    # element count is not a multiple of 128 (rare; NCHW demo shapes divide). ---
    lanes = _choose_lanes(n)
    padded_n = pl.cdiv(n, lanes) * lanes
    flat = x.reshape(-1)
    if padded_n != n:
        # Zero fill is safe: (0 - min) * scale is finite and sliced off below.
        flat = jnp.pad(flat, (0, padded_n - n))
    rows = padded_n // lanes
    slab = flat.reshape(rows, lanes)

    # --- block sizing: ~_TARGET_BLOCK_BYTES per grid step, dtype-aware sublane
    # rounding; small inputs use one full-extent block (always a legal shape). ---
    tile_rows = max(sub, (_TARGET_BLOCK_BYTES // (lanes * itemsize)) // sub * sub)
    if rows <= tile_rows:
        tile_rows = rows          # single block == full rows extent
    grid = (pl.cdiv(rows, tile_rows),)

    # Scalars ride in SMEM: [shift, scale]; reciprocal precomputed once.
    mn = jnp.asarray(min_val, jnp.float32)
    mx = jnp.asarray(max_val, jnp.float32)
    sc = jnp.stack([mn, 1.0 / (mx - mn + _EPS)])

    out = pl.pallas_call(
        _minmax_kernel,
        out_shape=jax.ShapeDtypeStruct((rows, lanes), orig_dtype),
        grid_spec=pltpu.PrefetchScalarGridSpec(
            num_scalar_prefetch=0,
            grid=grid,
            in_specs=[
                pl.BlockSpec(memory_space=pltpu.MemorySpace.SMEM),   # (2,) scalars
                pl.BlockSpec((tile_rows, lanes), lambda i: (i, 0)),  # streamed slab
            ],
            out_specs=pl.BlockSpec((tile_rows, lanes), lambda i: (i, 0)),
        ),
        compiler_params=pltpu.CompilerParams(
            # Single parallel axis lets the grid shard across both TensorCores
            # on v7x; harmless on single-TC chips.
            dimension_semantics=("parallel",),
        ),
        cost_estimate=pl.CostEstimate(
            flops=2 * n, transcendentals=0, bytes_accessed=2 * n * itemsize),
    )(sc, slab)

    result = out.reshape(-1)
    if padded_n != n:
        result = result[:n]
    return result.reshape(orig_shape)


if __name__ == "__main__":
    key = jax.random.PRNGKey(0)
    # NCHW-style input consistent with an image-normalization module.
    x = jax.random.uniform(key, (2, 4, 16, 16), dtype=jnp.float32,
                           minval=0.0, maxval=1.0)

    y = jax.block_until_ready(minmax_normalize_forward(x))

    y_ref = (x - 0.0) / (1.0 - 0.0 + _EPS)
    assert y.shape == x.shape and y.dtype == x.dtype
    assert jnp.allclose(y, y_ref, atol=1e-6, rtol=1e-6), "mismatch vs reference"

    # Ragged element count exercises the (rare) pad + slice path.
    x2 = jax.random.normal(jax.random.PRNGKey(1), (3, 5, 7), dtype=jnp.float32)
    y2 = jax.block_until_ready(minmax_normalize_forward(x2))
    y2_ref = (x2 - 0.0) / (1.0 - 0.0 + _EPS)
    assert jnp.allclose(y2, y2_ref, atol=1e-6, rtol=1e-6), "mismatch (ragged path)"

    print("KERNEL_OK")
</pallas_src>

<mosaic_0001>
module attributes {stable_mosaic.version = 11 : i64} {
  func.func @_minmax_kernel(%arg0: i32, %arg1: memref<2xf32, #tpu.memory_space<smem>>, %arg2: memref<2x1024xf32, #tpu.memory_space<vmem>>, %arg3: memref<2x1024xf32, #tpu.memory_space<vmem>>) attributes {dimension_semantics = [#tpu.dimension_semantics<parallel>], iteration_bounds = array<i64: 1>, scalar_prefetch = 0 : i64, scratch_operands = 0 : i64, tpu.core_type = #tpu.core_type<tc>, window_params = [{transform_indices = @transform_0, window_bounds = array<i64: 2>}, {transform_indices = @transform_1, window_bounds = array<i64: 2, 1024>}, {transform_indices = @transform_2, window_bounds = array<i64: 2, 1024>}]} {
    %c0 = arith.constant 0 : index
    %0 = memref.load %arg1[%c0] : memref<2xf32, #tpu.memory_space<smem>>
    %c1 = arith.constant 1 : index
    %1 = memref.load %arg1[%c1] : memref<2xf32, #tpu.memory_space<smem>>
    %c0_0 = arith.constant 0 : index
    %c0_1 = arith.constant 0 : index
    %2 = vector.load %arg2[%c0_0, %c0_1] : memref<2x1024xf32, #tpu.memory_space<vmem>>, vector<2x1024xf32>
    %3 = vector.broadcast %0 : f32 to vector<2x1024xf32>
    %4 = arith.subf %2, %3 : vector<2x1024xf32>
    %5 = vector.broadcast %1 : f32 to vector<2x1024xf32>
    %6 = arith.mulf %4, %5 : vector<2x1024xf32>
    %c0_2 = arith.constant 0 : index
    %c0_3 = arith.constant 0 : index
    %7 = vector.load %arg3[%c0_2, %c0_3] : memref<2x1024xf32, #tpu.memory_space<vmem>>, vector<2x1024xf32>
    tpu.vector_store %arg3[%c0_2, %c0_3], %6 {strides = array<i32>} : memref<2x1024xf32, #tpu.memory_space<vmem>>, vector<2x1024xf32>,
    return
  }
  func.func @transform_0(%arg0: i32) -> i32 {
    %c0_i32 = arith.constant 0 : i32
    %c0_i32_0 = arith.constant 0 : i32
    return %c0_i32 : i32
  }
  func.func @transform_1(%arg0: i32) -> (i32, i32) {
    %c0_i32 = arith.constant 0 : i32
    %c0_i32_0 = arith.constant 0 : i32
    return %arg0, %c0_i32 : i32, i32
  }
  func.func @transform_2(%arg0: i32) -> (i32, i32) {
    %c0_i32 = arith.constant 0 : i32
    %c0_i32_0 = arith.constant 0 : i32
    return %arg0, %c0_i32 : i32, i32
  }
}

</mosaic_0001>

<bundles_post_ra>
// kernel: minmax_normalize_forward.1
= control target key start
LH: loop header
LB: loop body
LE: loop exit
PB: predicated region body
PF: predicated region fallthrough
CT: control target
= control target key end

     0   :  { %7 = vsyncpa [#allocation3], 0  ;;  %s57_s12 = smov [#allocation2]   ;;  %s88_s0 = inlined_call_operand.vmem [shape: f32[2], index: 0, kind: input, shape index: {}]   ;;  %s89_s1 = inlined_call_operand.vmem [shape: f32[2,1024], index: 1, kind: input, shape index: {}]   ;;  %s90_s2 = inlined_call_operand.vmem [shape: f32[2,1024], index: 2, kind: output, shape index: {}]  }
   0x1   :  { %s13_s11 = sshll.u32 %s88_s0, 4  ;;  %s14_s11 = int_to_ptr.vmem [resolvable:$true] %s13_s11 }
   0x2   :  { %16 = dma.vmem_to_smem %s14_s11, 16, %s57_s12, [#allocation3]  }
   0x3   :  { %55 = dma.done.wait [#allocation3], 16  }
   0x4   :  { %56 = vsyncadd [#allocation3], 4294967280 }
   0x5   :  { %23 = sfence }
   0x6   :  { %s24_s13 = sld [smem:[#allocation2]]  ;;  %v26_v0 = vld [vmem:[%s89_s1] sm:$0xff]  ;;  %v27_v1 = vld [vmem:[%s89_s1 + $0x8] sm:$0xff] }
   0x7   :  { %s41_s14 = sld [smem:[#allocation2 + $0x1]] }
   0xc   :  { %v28_v2 = vstv %s24_s13 }
   0xd   :  { %v29_v3 = vsub.f32 %v26_v0, %v28_v2  ;;  %v31_v4 = vstv %s41_s14  ;;  %v30_v5 = vsub.f32 %v27_v1, %v28_v2 }
   0xf   :  { %v32_v6 = vmul.f32 %v31_v4, %v29_v3  ;;  %v33_v7 = vmul.f32 %v31_v4, %v30_v5 }
  0x11   :  { %34 = vst [vmem:[%s90_s2] sm:$0xff] %v32_v6 }
  0x12   :  { %35 = vst [vmem:[%s90_s2 + $0x8] sm:$0xff] %v33_v7 }
  0x13   :  { %40 = vsyncpa [#allocation3], 1 }

</bundles_post_ra>
